<compile_context>
chip_gen: v5e
topology: v5e:2x2
jax: 0.10.0
libtpu: 0.0.40
codegen_flags: <defaults>
</compile_context>

<pallas_src>
import math
import functools

import jax
import jax.numpy as jnp
from jax import lax
from jax.experimental import pallas as pl
from jax.experimental.pallas import tpu as pltpu


def encoder_block_kernel(h_ref, bias_ref,
                         wqkv_ref, bqkv_ref,
                         wf_ref, bf_ref,
                         gamma_ref, beta_ref,
                         out_ref,
                         ff_acc_ref,
                         *, head_size, compute_dtype):
    # Grid: (batch_block, head).  Head is the reduction ("arbitrary") axis.
    head = pl.program_id(1)
    num_heads = pl.num_programs(1)
    Bt, S, D = h_ref.shape
    Dh = head_size

    @pl.when(head == 0)
    def _init():
        ff_acc_ref[...] = jnp.zeros_like(ff_acc_ref)

    x = h_ref[...]                                        # (Bt, S, D) f32 (residual)
    x_c = x.reshape(Bt * S, D).astype(compute_dtype)

    # Per-head fused QKV projection: (Bt*S, D) @ (D, 3*Dh), f32 accumulation.
    # The 1/sqrt(dim_model) softmax scale is pre-folded into the Q weight/bias.
    qkv = jnp.dot(x_c, wqkv_ref[0],
                  preferred_element_type=jnp.float32) + bqkv_ref[0]   # (Bt*S, 3Dh)

    q = qkv[:, 0:Dh].reshape(Bt, S, Dh).astype(compute_dtype)
    k = qkv[:, Dh:2 * Dh].reshape(Bt, S, Dh).astype(compute_dtype)
    v = qkv[:, 2 * Dh:3 * Dh].reshape(Bt, S, Dh).astype(compute_dtype)

    # scores for this head only: (Bt, S, S) f32
    s = jnp.einsum('bqd,bkd->bqk', q, k, preferred_element_type=jnp.float32)
    s = s + bias_ref[...]                                 # (Bt, 1, S) broadcast

    # softmax over keys (f32); denominator reciprocal goes to the EUP slot.
    s = s - jnp.max(s, axis=-1, keepdims=True)
    p = jnp.exp(s)
    p = p * pl.reciprocal(jnp.sum(p, axis=-1, keepdims=True), approx=True)
    # attention dropout: identity in eval mode.

    ctx = jnp.einsum('bqk,bkd->bqd', p.astype(compute_dtype), v,
                     preferred_element_type=jnp.float32)  # (Bt, S, Dh)

    # Feed-forward split over heads: attn @ Wf == sum_h ctx_h @ Wf[h*Dh:(h+1)*Dh, :]
    ff_acc_ref[...] += jnp.dot(ctx.reshape(Bt * S, Dh).astype(compute_dtype),
                               wf_ref[0],
                               preferred_element_type=jnp.float32).reshape(Bt, S, D)

    @pl.when(head == num_heads - 1)
    def _finalize():
        ff = ff_acc_ref[...] + bf_ref[...]                # (Bt, S, D) f32
        # GELU, tanh approximation (as in the reference module).
        g = 0.5 * ff * (1.0 + jnp.tanh(math.sqrt(2.0 / math.pi)
                                       * (ff + 0.044715 * ff * ff * ff)))
        # Dropout(p=0.2): identity in eval mode.
        resid = x + g
        mean = jnp.mean(resid, axis=-1, keepdims=True)
        cent = resid - mean
        var = jnp.mean(cent * cent, axis=-1, keepdims=True)
        normed = cent * lax.rsqrt(var + 1e-10)
        out_ref[...] = (normed * gamma_ref[...] + beta_ref[...]).astype(out_ref.dtype)


def _pick_batch_block(batch, requested):
    if requested is not None:
        assert batch % requested == 0
        return requested
    for bt in (8, 4, 2, 1):
        if bt <= batch and batch % bt == 0:
            return bt
    return 1


def transformer_encoder_block(hidden, attention_mask, params, num_heads, *,
                              compute_dtype=jnp.bfloat16,
                              batch_block=None,
                              vmem_limit_bytes=None):
    """hidden: (B, S, D) f32; attention_mask: (B, S) f32 of 0/1."""
    B, S, D = hidden.shape
    assert D % num_heads == 0
    H = num_heads
    Dh = D // H
    Bt = _pick_batch_block(B, batch_block)

    wq, bq, wk, bk, wv, bv, wf, bf, gamma, beta = params

    # --- host-side weight prep (one-time) ---
    scale = 1.0 / math.sqrt(float(D))     # reference divides by sqrt(dim_model)
    wq_h = (wq * scale).reshape(D, H, Dh)
    wk_h = wk.reshape(D, H, Dh)
    wv_h = wv.reshape(D, H, Dh)
    # per-head fused QKV weight blocks: (H, D, 3*Dh), bf16 operands by default.
    wqkv = jnp.transpose(jnp.concatenate([wq_h, wk_h, wv_h], axis=-1),
                         (1, 0, 2)).astype(compute_dtype)
    bqkv = jnp.concatenate([(bq * scale).reshape(H, 1, Dh),
                            bk.reshape(H, 1, Dh),
                            bv.reshape(H, 1, Dh)], axis=-1).astype(jnp.float32)
    # per-head feed-forward contraction blocks: (H, Dh, D)
    wf_h = wf.reshape(H, Dh, D).astype(compute_dtype)

    # mask bias precomputed host-side: (B, 1, S), added directly to the scores.
    mask_bias = ((1.0 - attention_mask.astype(jnp.float32))
                 * (-10000.0)).reshape(B, 1, S)

    def row(v):  # (N,) -> (1, N) f32 for a clean 2-D TPU layout
        return v.reshape(1, -1).astype(jnp.float32)

    if vmem_limit_bytes is None:
        # Generation-aware limit: ~3/4 of physical VMEM, leaving compiler headroom
        # (v5e/v6e: 128 MiB -> 96 MiB; v7x: 64 MiB -> 48 MiB).
        try:
            cap = pltpu.get_tpu_info().vmem_capacity_bytes
        except Exception:
            cap = 64 * 1024 * 1024
        vmem_limit_bytes = int(cap) * 3 // 4

    kernel = functools.partial(encoder_block_kernel,
                               head_size=Dh,
                               compute_dtype=compute_dtype)

    grid_spec = pltpu.PrefetchScalarGridSpec(
        num_scalar_prefetch=0,
        grid=(B // Bt, H),                                  # (parallel, arbitrary)
        in_specs=[
            pl.BlockSpec((Bt, S, D), lambda b, h: (b, 0, 0)),       # hidden
            pl.BlockSpec((Bt, 1, S), lambda b, h: (b, 0, 0)),       # mask bias
            pl.BlockSpec((1, D, 3 * Dh), lambda b, h: (h, 0, 0)),   # per-head Wqkv
            pl.BlockSpec((1, 1, 3 * Dh), lambda b, h: (h, 0, 0)),   # per-head bqkv
            pl.BlockSpec((1, Dh, D), lambda b, h: (h, 0, 0)),       # per-head Wf rows
            pl.BlockSpec((1, D), lambda b, h: (0, 0)),              # b_ff
            pl.BlockSpec((1, D), lambda b, h: (0, 0)),              # gamma
            pl.BlockSpec((1, D), lambda b, h: (0, 0)),              # beta
        ],
        out_specs=pl.BlockSpec((Bt, S, D), lambda b, h: (b, 0, 0)),
        scratch_shapes=[pltpu.VMEM((Bt, S, D), jnp.float32)],       # FF accumulator
    )

    return pl.pallas_call(
        kernel,
        out_shape=jax.ShapeDtypeStruct((B, S, D), jnp.float32),
        grid_spec=grid_spec,
        compiler_params=pltpu.CompilerParams(
            dimension_semantics=("parallel", "arbitrary"),
            vmem_limit_bytes=vmem_limit_bytes),
    )(hidden.astype(jnp.float32), mask_bias, wqkv, bqkv, wf_h,
      row(bf), row(gamma), row(beta))


def init_params(key, dim_model):
    ks = jax.random.split(key, 8)
    scale = 0.02
    wq = scale * jax.random.normal(ks[0], (dim_model, dim_model), jnp.float32)
    bq = scale * jax.random.normal(ks[1], (dim_model,), jnp.float32)
    wk = scale * jax.random.normal(ks[2], (dim_model, dim_model), jnp.float32)
    bk = scale * jax.random.normal(ks[3], (dim_model,), jnp.float32)
    wv = scale * jax.random.normal(ks[4], (dim_model, dim_model), jnp.float32)
    bv = scale * jax.random.normal(ks[5], (dim_model,), jnp.float32)
    wf = scale * jax.random.normal(ks[6], (dim_model, dim_model), jnp.float32)
    bf = scale * jax.random.normal(ks[7], (dim_model,), jnp.float32)
    gamma = jnp.ones((dim_model,), jnp.float32)   # nn.LayerNorm default init
    beta = jnp.zeros((dim_model,), jnp.float32)
    return (wq, bq, wk, bk, wv, bv, wf, bf, gamma, beta)


def reference_forward(hidden, attention_mask, params, num_heads):
    """Pure-JAX reference of the intended PyTorch forward (eval mode)."""
    wq, bq, wk, bk, wv, bv, wf, bf, gamma, beta = params
    B, S, D = hidden.shape
    Dh = D // num_heads

    def split(x):  # (B,S,D) -> (B,H,S,Dh)
        return x.reshape(B, S, num_heads, Dh).transpose(0, 2, 1, 3)

    q = split(hidden @ wq + bq)
    k = split(hidden @ wk + bk)
    v = split(hidden @ wv + bv)
    s = jnp.einsum('bhqd,bhkd->bhqk', q, k) / math.sqrt(float(D))
    s = s + (1.0 - attention_mask)[:, None, None, :] * (-10000.0)
    p = jax.nn.softmax(s, axis=-1)
    ctx = jnp.einsum('bhqk,bhkd->bhqd', p, v)
    attn = ctx.transpose(0, 2, 1, 3).reshape(B, S, D)
    ff = attn @ wf + bf
    g = 0.5 * ff * (1.0 + jnp.tanh(math.sqrt(2.0 / math.pi)
                                   * (ff + 0.044715 * ff ** 3)))
    resid = hidden + g
    mean = resid.mean(-1, keepdims=True)
    var = ((resid - mean) ** 2).mean(-1, keepdims=True)
    return (resid - mean) / jnp.sqrt(var + 1e-10) * gamma + beta


if __name__ == "__main__":
    B, S, D, H = 2, 8, 32, 4

    key = jax.random.PRNGKey(0)
    k_x, k_p = jax.random.split(key)
    hidden = jax.random.normal(k_x, (B, S, D), jnp.float32)
    # exercise masking: last two tokens of the second sequence are padding
    attention_mask = jnp.ones((B, S), jnp.float32).at[1, S - 2:].set(0.0)
    params = init_params(k_p, D)

    ref = reference_forward(hidden, attention_mask, params, H)

    # f32 MXU path (tighter parity with the PyTorch reference)
    out_f32 = transformer_encoder_block(hidden, attention_mask, params, H,
                                        compute_dtype=jnp.float32)
    out_f32 = jax.block_until_ready(out_f32)
    assert out_f32.shape == (B, S, D)
    assert jnp.isfinite(out_f32).all()
    err_f32 = float(jnp.max(jnp.abs(out_f32 - ref)))
    assert err_f32 < 1e-2, f"f32 max abs error vs reference too large: {err_f32}"

    # default bf16 MXU path (performance configuration)
    out_bf16 = transformer_encoder_block(hidden, attention_mask, params, H)
    out_bf16 = jax.block_until_ready(out_bf16)
    assert out_bf16.shape == (B, S, D)
    assert jnp.isfinite(out_bf16).all()
    err_bf16 = float(jnp.max(jnp.abs(out_bf16 - ref)))
    assert err_bf16 < 3e-2, f"bf16 max abs error vs reference too large: {err_bf16}"

    print("KERNEL_OK")
</pallas_src>

<mosaic_0001>
module attributes {stable_mosaic.version = 11 : i64} {
  func.func @encoder_block_kernel(%arg0: i32, %arg1: i32, %arg2: memref<2x8x32xf32, #tpu.memory_space<vmem>>, %arg3: memref<2x1x8xf32, #tpu.memory_space<vmem>>, %arg4: memref<1x32x24xf32, #tpu.memory_space<vmem>>, %arg5: memref<1x1x24xf32, #tpu.memory_space<vmem>>, %arg6: memref<1x8x32xf32, #tpu.memory_space<vmem>>, %arg7: memref<1x32xf32, #tpu.memory_space<vmem>>, %arg8: memref<1x32xf32, #tpu.memory_space<vmem>>, %arg9: memref<1x32xf32, #tpu.memory_space<vmem>>, %arg10: memref<2x8x32xf32, #tpu.memory_space<vmem>>, %arg11: memref<2x8x32xf32, #tpu.memory_space<vmem>>) attributes {dimension_semantics = [#tpu.dimension_semantics<parallel>, #tpu.dimension_semantics<arbitrary>], iteration_bounds = array<i64: 1, 4>, scalar_prefetch = 0 : i64, scratch_operands = 1 : i64, tpu.core_type = #tpu.core_type<tc>, window_params = [{transform_indices = @transform_0, window_bounds = array<i64: 2, 8, 32>}, {transform_indices = @transform_1, window_bounds = array<i64: 2, 1, 8>}, {transform_indices = @transform_2, window_bounds = array<i64: 1, 32, 24>}, {transform_indices = @transform_3, window_bounds = array<i64: 1, 1, 24>}, {transform_indices = @transform_4, window_bounds = array<i64: 1, 8, 32>}, {pipeline_mode = #tpu.pipeline_mode<synchronous>, transform_indices = @transform_5, window_bounds = array<i64: 1, 32>}, {pipeline_mode = #tpu.pipeline_mode<synchronous>, transform_indices = @transform_6, window_bounds = array<i64: 1, 32>}, {pipeline_mode = #tpu.pipeline_mode<synchronous>, transform_indices = @transform_7, window_bounds = array<i64: 1, 32>}, {transform_indices = @transform_8, window_bounds = array<i64: 2, 8, 32>}]} {
    %c0_i32 = arith.constant 0 : i32
    %0 = arith.cmpi eq, %arg1, %c0_i32 : i32
    %1 = arith.extui %0 : i1 to i32
    %c0_i32_0 = arith.constant 0 : i32
    %2 = arith.cmpi ne, %1, %c0_i32_0 : i32
    scf.if %2 {
      %cst_27 = arith.constant 0.000000e+00 : f32
      %44 = vector.broadcast %cst_27 : f32 to vector<2x8x32xf32>
      %c0_28 = arith.constant 0 : index
      %c0_29 = arith.constant 0 : index
      %c0_30 = arith.constant 0 : index
      %45 = vector.load %arg11[%c0_28, %c0_29, %c0_30] : memref<2x8x32xf32, #tpu.memory_space<vmem>>, vector<2x8x32xf32>
      tpu.vector_store %arg11[%c0_28, %c0_29, %c0_30], %44 {strides = array<i32>} : memref<2x8x32xf32, #tpu.memory_space<vmem>>, vector<2x8x32xf32>,
    } else {
    }
    %c0 = arith.constant 0 : index
    %c0_1 = arith.constant 0 : index
    %c0_2 = arith.constant 0 : index
    %3 = vector.load %arg2[%c0, %c0_1, %c0_2] : memref<2x8x32xf32, #tpu.memory_space<vmem>>, vector<2x8x32xf32>
    %4 = vector.shape_cast %3 : vector<2x8x32xf32> to vector<16x32xf32>
    %c0_3 = arith.constant 0 : index
    %c0_4 = arith.constant 0 : index
    %c0_5 = arith.constant 0 : index
    %5 = vector.load %arg4[%c0_3, %c0_4, %c0_5] : memref<1x32x24xf32, #tpu.memory_space<vmem>>, vector<1x32x24xf32>
    %6 = vector.shape_cast %5 : vector<1x32x24xf32> to vector<32x24xf32>
    %cst = arith.constant dense<0.000000e+00> : vector<16x24xf32>
    %7 = tpu.matmul %4, %6, %cst {dimension_numbers = #tpu.dot_dimension_numbers<[1], [0], [0], [1], [0, 0, 1, 1], [], []>} : vector<16x32xf32>, vector<32x24xf32>, vector<16x24xf32> -> vector<16x24xf32>
    %c0_6 = arith.constant 0 : index
    %c0_7 = arith.constant 0 : index
    %c0_8 = arith.constant 0 : index
    %8 = vector.load %arg5[%c0_6, %c0_7, %c0_8] : memref<1x1x24xf32, #tpu.memory_space<vmem>>, vector<1x1x24xf32>
    %9 = vector.shape_cast %8 : vector<1x1x24xf32> to vector<1x24xf32>
    %10 = vector.broadcast %9 : vector<1x24xf32> to vector<16x24xf32>
    %11 = arith.addf %7, %10 : vector<16x24xf32>
    %12 = vector.extract_strided_slice %11 {offsets = [0, 0], sizes = [16, 8], strides = [1, 1]} : vector<16x24xf32> to vector<16x8xf32>
    %13 = vector.shape_cast %12 : vector<16x8xf32> to vector<2x8x8xf32>
    %14 = vector.extract_strided_slice %11 {offsets = [0, 8], sizes = [16, 8], strides = [1, 1]} : vector<16x24xf32> to vector<16x8xf32>
    %15 = vector.shape_cast %14 : vector<16x8xf32> to vector<2x8x8xf32>
    %16 = vector.extract_strided_slice %11 {offsets = [0, 16], sizes = [16, 8], strides = [1, 1]} : vector<16x24xf32> to vector<16x8xf32>
    %17 = vector.shape_cast %16 : vector<16x8xf32> to vector<2x8x8xf32>
    "tpu.trace_start"() <{level = 10 : i32, message = "bqd,bkd->bqk"}> : () -> ()
    %cst_9 = arith.constant dense<0.000000e+00> : vector<2x8x8xf32>
    %18 = tpu.matmul %13, %15, %cst_9 {dimension_numbers = #tpu.dot_dimension_numbers<[2], [2], [1], [1], [0, 0, 0, 1, 1, 1], [0], [0]>} : vector<2x8x8xf32>, vector<2x8x8xf32>, vector<2x8x8xf32> -> vector<2x8x8xf32>
    "tpu.trace_stop"() : () -> ()
    %c0_10 = arith.constant 0 : index
    %c0_11 = arith.constant 0 : index
    %c0_12 = arith.constant 0 : index
    %19 = vector.load %arg3[%c0_10, %c0_11, %c0_12] : memref<2x1x8xf32, #tpu.memory_space<vmem>>, vector<2x1x8xf32>
    %20 = vector.broadcast %19 : vector<2x1x8xf32> to vector<2x8x8xf32>
    %21 = arith.addf %18, %20 : vector<2x8x8xf32>
    %cst_13 = arith.constant dense<0xFF800000> : vector<2x8xf32>
    %22 = vector.multi_reduction <maximumf>, %21, %cst_13 [2] : vector<2x8x8xf32> to vector<2x8xf32>
    %23 = vector.shape_cast %22 : vector<2x8xf32> to vector<2x8x1xf32>
    %24 = vector.broadcast %23 : vector<2x8x1xf32> to vector<2x8x8xf32>
    %25 = arith.subf %21, %24 : vector<2x8x8xf32>
    %26 = math.exp %25 : vector<2x8x8xf32>
    %cst_14 = arith.constant dense<0.000000e+00> : vector<2x8xf32>
    %27 = vector.multi_reduction <add>, %26, %cst_14 [2] : vector<2x8x8xf32> to vector<2x8xf32>
    %28 = vector.shape_cast %27 : vector<2x8xf32> to vector<2x8x1xf32>
    %29 = tpu.reciprocal %28 {approx = true} : vector<2x8x1xf32> -> vector<2x8x1xf32>
    %30 = vector.broadcast %29 : vector<2x8x1xf32> to vector<2x8x8xf32>
    %31 = arith.mulf %26, %30 : vector<2x8x8xf32>
    "tpu.trace_start"() <{level = 10 : i32, message = "bqk,bkd->bqd"}> : () -> ()
    %cst_15 = arith.constant dense<0.000000e+00> : vector<2x8x8xf32>
    %32 = tpu.matmul %31, %17, %cst_15 {dimension_numbers = #tpu.dot_dimension_numbers<[2], [1], [1], [2], [0, 0, 0, 1, 1, 2], [0], [0]>} : vector<2x8x8xf32>, vector<2x8x8xf32>, vector<2x8x8xf32> -> vector<2x8x8xf32>
    "tpu.trace_stop"() : () -> ()
    %c0_16 = arith.constant 0 : index
    %c0_17 = arith.constant 0 : index
    %c0_18 = arith.constant 0 : index
    %33 = vector.load %arg11[%c0_16, %c0_17, %c0_18] : memref<2x8x32xf32, #tpu.memory_space<vmem>>, vector<2x8x32xf32>
    %34 = vector.shape_cast %32 : vector<2x8x8xf32> to vector<16x8xf32>
    %c0_19 = arith.constant 0 : index
    %c0_20 = arith.constant 0 : index
    %c0_21 = arith.constant 0 : index
    %35 = vector.load %arg6[%c0_19, %c0_20, %c0_21] : memref<1x8x32xf32, #tpu.memory_space<vmem>>, vector<1x8x32xf32>
    %36 = vector.shape_cast %35 : vector<1x8x32xf32> to vector<8x32xf32>
    %cst_22 = arith.constant dense<0.000000e+00> : vector<16x32xf32>
    %37 = tpu.matmul %34, %36, %cst_22 {dimension_numbers = #tpu.dot_dimension_numbers<[1], [0], [0], [1], [0, 0, 1, 1], [], []>} : vector<16x8xf32>, vector<8x32xf32>, vector<16x32xf32> -> vector<16x32xf32>
    %38 = vector.shape_cast %37 : vector<16x32xf32> to vector<2x8x32xf32>
    %39 = arith.addf %33, %38 : vector<2x8x32xf32>
    %c0_23 = arith.constant 0 : index
    %c0_24 = arith.constant 0 : index
    %c0_25 = arith.constant 0 : index
    %40 = vector.load %arg11[%c0_23, %c0_24, %c0_25] : memref<2x8x32xf32, #tpu.memory_space<vmem>>, vector<2x8x32xf32>
    tpu.vector_store %arg11[%c0_23, %c0_24, %c0_25], %39 {strides = array<i32>} : memref<2x8x32xf32, #tpu.memory_space<vmem>>, vector<2x8x32xf32>,
    %c3_i32 = arith.constant 3 : i32
    %41 = arith.cmpi eq, %arg1, %c3_i32 : i32
    %42 = arith.extui %41 : i1 to i32
    %c0_i32_26 = arith.constant 0 : i32
    %43 = arith.cmpi ne, %42, %c0_i32_26 : i32
    scf.if %43 {
      %c0_27 = arith.constant 0 : index
      %c0_28 = arith.constant 0 : index
      %c0_29 = arith.constant 0 : index
      %44 = vector.load %arg11[%c0_27, %c0_28, %c0_29] : memref<2x8x32xf32, #tpu.memory_space<vmem>>, vector<2x8x32xf32>
      %c0_30 = arith.constant 0 : index
      %c0_31 = arith.constant 0 : index
      %45 = vector.load %arg7[%c0_30, %c0_31] : memref<1x32xf32, #tpu.memory_space<vmem>>, vector<1x32xf32>
      %46 = vector.shape_cast %45 : vector<1x32xf32> to vector<1x1x32xf32>
      %47 = vector.broadcast %46 : vector<1x1x32xf32> to vector<2x8x32xf32>
      %48 = arith.addf %44, %47 : vector<2x8x32xf32>
      %cst_32 = arith.constant 5.000000e-01 : f32
      %49 = vector.broadcast %cst_32 : f32 to vector<2x8x32xf32>
      %50 = arith.mulf %49, %48 : vector<2x8x32xf32>
      %cst_33 = arith.constant 4.471500e-02 : f32
      %51 = vector.broadcast %cst_33 : f32 to vector<2x8x32xf32>
      %52 = arith.mulf %51, %48 : vector<2x8x32xf32>
      %53 = arith.mulf %52, %48 : vector<2x8x32xf32>
      %54 = arith.mulf %53, %48 : vector<2x8x32xf32>
      %55 = arith.addf %48, %54 : vector<2x8x32xf32>
      %cst_34 = arith.constant 0.797884583 : f32
      %56 = vector.broadcast %cst_34 : f32 to vector<2x8x32xf32>
      %57 = arith.mulf %56, %55 : vector<2x8x32xf32>
      %58 = math.tanh %57 : vector<2x8x32xf32>
      %cst_35 = arith.constant 1.000000e+00 : f32
      %59 = vector.broadcast %cst_35 : f32 to vector<2x8x32xf32>
      %60 = arith.addf %59, %58 : vector<2x8x32xf32>
      %61 = arith.mulf %50, %60 : vector<2x8x32xf32>
      %62 = arith.addf %3, %61 : vector<2x8x32xf32>
      %cst_36 = arith.constant dense<0.000000e+00> : vector<2x8xf32>
      %63 = vector.multi_reduction <add>, %62, %cst_36 [2] : vector<2x8x32xf32> to vector<2x8xf32>
      %64 = vector.shape_cast %63 : vector<2x8xf32> to vector<2x8x1xf32>
      %cst_37 = arith.constant 3.200000e+01 : f32
      %65 = vector.broadcast %cst_37 : f32 to vector<2x8x1xf32>
      %66 = arith.divf %64, %65 : vector<2x8x1xf32>
      %67 = vector.broadcast %66 : vector<2x8x1xf32> to vector<2x8x32xf32>
      %68 = arith.subf %62, %67 : vector<2x8x32xf32>
      %69 = arith.mulf %68, %68 : vector<2x8x32xf32>
      %cst_38 = arith.constant dense<0.000000e+00> : vector<2x8xf32>
      %70 = vector.multi_reduction <add>, %69, %cst_38 [2] : vector<2x8x32xf32> to vector<2x8xf32>
      %71 = vector.shape_cast %70 : vector<2x8xf32> to vector<2x8x1xf32>
      %cst_39 = arith.constant 3.200000e+01 : f32
      %72 = vector.broadcast %cst_39 : f32 to vector<2x8x1xf32>
      %73 = arith.divf %71, %72 : vector<2x8x1xf32>
      %cst_40 = arith.constant 1.000000e-10 : f32
      %74 = vector.broadcast %cst_40 : f32 to vector<2x8x1xf32>
      %75 = arith.addf %73, %74 : vector<2x8x1xf32>
      %76 = math.rsqrt %75 : vector<2x8x1xf32>
      %77 = vector.broadcast %76 : vector<2x8x1xf32> to vector<2x8x32xf32>
      %78 = arith.mulf %68, %77 : vector<2x8x32xf32>
      %c0_41 = arith.constant 0 : index
      %c0_42 = arith.constant 0 : index
      %79 = vector.load %arg8[%c0_41, %c0_42] : memref<1x32xf32, #tpu.memory_space<vmem>>, vector<1x32xf32>
      %80 = vector.shape_cast %79 : vector<1x32xf32> to vector<1x1x32xf32>
      %81 = vector.broadcast %80 : vector<1x1x32xf32> to vector<2x8x32xf32>
      %82 = arith.mulf %78, %81 : vector<2x8x32xf32>
      %c0_43 = arith.constant 0 : index
      %c0_44 = arith.constant 0 : index
      %83 = vector.load %arg9[%c0_43, %c0_44] : memref<1x32xf32, #tpu.memory_space<vmem>>, vector<1x32xf32>
      %84 = vector.shape_cast %83 : vector<1x32xf32> to vector<1x1x32xf32>
      %85 = vector.broadcast %84 : vector<1x1x32xf32> to vector<2x8x32xf32>
      %86 = arith.addf %82, %85 : vector<2x8x32xf32>
      %c0_45 = arith.constant 0 : index
      %c0_46 = arith.constant 0 : index
      %c0_47 = arith.constant 0 : index
      %87 = vector.load %arg10[%c0_45, %c0_46, %c0_47] : memref<2x8x32xf32, #tpu.memory_space<vmem>>, vector<2x8x32xf32>
      tpu.vector_store %arg10[%c0_45, %c0_46, %c0_47], %86 {strides = array<i32>} : memref<2x8x32xf32, #tpu.memory_space<vmem>>, vector<2x8x32xf32>,
    } else {
    }
    return
  }
  func.func @transform_0(%arg0: i32, %arg1: i32) -> (i32, i32, i32) {
    %c0_i32 = arith.constant 0 : i32
    %c0_i32_0 = arith.constant 0 : i32
    %c0_i32_1 = arith.constant 0 : i32
    return %arg0, %c0_i32, %c0_i32_0 : i32, i32, i32
  }
  func.func @transform_1(%arg0: i32, %arg1: i32) -> (i32, i32, i32) {
    %c0_i32 = arith.constant 0 : i32
    %c0_i32_0 = arith.constant 0 : i32
    %c0_i32_1 = arith.constant 0 : i32
    return %arg0, %c0_i32, %c0_i32_0 : i32, i32, i32
  }
  func.func @transform_2(%arg0: i32, %arg1: i32) -> (i32, i32, i32) {
    %c0_i32 = arith.constant 0 : i32
    %c0_i32_0 = arith.constant 0 : i32
    %c0_i32_1 = arith.constant 0 : i32
    return %arg1, %c0_i32, %c0_i32_0 : i32, i32, i32
  }
  func.func @transform_3(%arg0: i32, %arg1: i32) -> (i32, i32, i32) {
    %c0_i32 = arith.constant 0 : i32
    %c0_i32_0 = arith.constant 0 : i32
    %c0_i32_1 = arith.constant 0 : i32
    return %arg1, %c0_i32, %c0_i32_0 : i32, i32, i32
  }
  func.func @transform_4(%arg0: i32, %arg1: i32) -> (i32, i32, i32) {
    %c0_i32 = arith.constant 0 : i32
    %c0_i32_0 = arith.constant 0 : i32
    %c0_i32_1 = arith.constant 0 : i32
    return %arg1, %c0_i32, %c0_i32_0 : i32, i32, i32
  }
  func.func @transform_5(%arg0: i32, %arg1: i32) -> (i32, i32) {
    %c0_i32 = arith.constant 0 : i32
    %c0_i32_0 = arith.constant 0 : i32
    %c0_i32_1 = arith.constant 0 : i32
    return %c0_i32, %c0_i32_0 : i32, i32
  }
  func.func @transform_6(%arg0: i32, %arg1: i32) -> (i32, i32) {
    %c0_i32 = arith.constant 0 : i32
    %c0_i32_0 = arith.constant 0 : i32
    %c0_i32_1 = arith.constant 0 : i32
    return %c0_i32, %c0_i32_0 : i32, i32
  }
  func.func @transform_7(%arg0: i32, %arg1: i32) -> (i32, i32) {
    %c0_i32 = arith.constant 0 : i32
    %c0_i32_0 = arith.constant 0 : i32
    %c0_i32_1 = arith.constant 0 : i32
    return %c0_i32, %c0_i32_0 : i32, i32
  }
  func.func @transform_8(%arg0: i32, %arg1: i32) -> (i32, i32, i32) {
    %c0_i32 = arith.constant 0 : i32
    %c0_i32_0 = arith.constant 0 : i32
    %c0_i32_1 = arith.constant 0 : i32
    return %arg0, %c0_i32, %c0_i32_0 : i32, i32, i32
  }
}

</mosaic_0001>

<bundles_post_ra>
// kernel: tpu_custom_call.1
= control target key start
LH: loop header
LB: loop body
LE: loop exit
PB: predicated region body
PF: predicated region fallthrough
CT: control target
= control target key end

     0   :  { %13 = vsyncpa [#allocation4], 0  ;;  %s1006_s27 = smov 0   ;;  %s1008_s28 = smov 0   ;;  %s1108_s0 = inlined_call_operand.vmem [shape: f32[2,8,32], index: 0, kind: input, shape index: {}]   ;;  %s1109_s1 = inlined_call_operand.vmem [shape: f32[2,1,8], index: 1, kind: input, shape index: {}]   ;;  %s1110_s2 = inlined_call_operand.vmem [shape: f32[4,32,24], index: 2, kind: input, shape index: {}]   ;;  %s1111_s3 = inlined_call_operand.vmem [shape: f32[4,1,24], index: 3, kind: input, shape index: {}]   ;;  %s1112_s4 = inlined_call_operand.vmem [shape: f32[4,8,32], index: 4, kind: input, shape index: {}]   ;;  %s1113_s5 = inlined_call_operand.vmem [shape: f32[1,32], index: 5, kind: input, shape index: {}]   ;;  %s1114_s6 = inlined_call_operand.vmem [shape: f32[1,32], index: 6, kind: input, shape index: {}]   ;;  %s1115_s7 = inlined_call_operand.vmem [shape: f32[1,32], index: 7, kind: input, shape index: {}]   ;;  %s1116_s8 = inlined_call_operand.hbm [shape: f32[2,8,32], index: 8, kind: output, shape index: {}]  }
   0x1   :  { %s1010_s29 = smov 0  }
   0x2 LB: > { %s811_s30 = sadd.s32 4294967295, %s952_s29   ;;  %s28_s9 = sadd.s32 1, %s948_s28  ;;  %s952_s29 = sphi %s1010_s29, %s19_s29   ;;  %s948_s28 = sphi %s1008_s28, %s1118_s28   ;;  %s944_s27 = sphi %s1006_s27, %s1117_s27  }
   0x3   : > { %p29_p0 = scmp.ge.s32.totalorder %s28_s9, 4  ;;  %p816_p1 = scmp.ge.s32.totalorder %s952_s29, 1 }
   0x4   : > { %p313_p2 = scmp.lt.s32.totalorder %s952_s29, 5 }
   0x5   : > { %s1120_s9 = smov (%p29_p0, %s28_s9), 0 }
   0x6   : > { %p314_p3 = pnand %p816_p1, %p313_p2 }
   0x7   : > { %p369_p4 = scmp.lt.s32.totalorder (!%p314_p3), %s944_s27, 3  ;;  %p820_p5 = scmp.ne.s32.totalorder (!%p314_p3), %s944_s27, 0 }
   0x8   : > { %317 = sbr.rel (%p314_p3) target bundleno = 1243 (0x4db), region = 52 }
   0xd   : > { %s370_s10 = scalar_select %p369_p4, %s944_s27, 3 }
   0xe   : > { %385 = sbr.rel (%p820_p5) target bundleno = 22 (0x16), region = 56 }
   0xf   : > { %s836_s11 = sshll.u32 %s370_s10, 5  ;;  %s376_s14 = scalar_lea.vmem %s1111_s3, %s370_s10 }
  0x10   : > { %s373_s17 = scalar_lea.vmem %s1110_s2, %s836_s11  ;;  %s819_s18 = sshll.u32 %s370_s10, 3 }
  0x11   : > { %s1038_s21 = scalar_lea.vmem %s1112_s4, %s819_s18 }
  0x13   : > { %vm386_vm0 = vcmask 261120   ;;  %v954_v0 = vmov 0.0  }
  0x14   : > { %387 = vst.msk [vmem:[#allocation2] sm:$0xff] %vm386_vm0, %v954_v0 }
  0x15   : > { %388 = vst.msk [vmem:[#allocation2 + $0x8] sm:$0xff] %vm386_vm0, %v954_v0 }
  0x16 PF: > { %v394_v1 = vld [vmem:[%s373_s17 + $0x18] sm:$0xff]  ;;  %v393_v2 = vld [vmem:[%s373_s17 + $0x10] sm:$0xff]  ;;  %v392_v3 = vld [vmem:[%s373_s17 + $0x8] sm:$0xff]  ;;  %vm399_vm1 = vcmask 261120   ;;  %s955_s26 = smov 120   ;;  %s956_s10 = smov 112  }
  0x17   : > { %418 = vmatpush.msra.mxu0 %v394_v1  ;;  %v391_v4 = vld [vmem:[%s373_s17] sm:$0xff]  ;;  %v1051_v6 = vld [vmem:[%s1108_s0 + $0x8] sm:$0xff]  ;;  %vm440_vm2 = vcmask 64512   ;;  %p831_p6 = scmp.ne.s32.totalorder %s944_s27, 3 }
  0x18   : > { %v1044_v5 = vld [vmem:[%s1108_s0] sm:$0xff] }
  0x19   : > { %419 = vmatpush.msra.mxu0 %v393_v2  ;;  %v874_v7 = vld [vmem:[%s376_s14] ss:$0 sm:$0xff]  ;;  %v876_v19 = vld [vmem:[%s1109_s1 + $0x1] ss:$0 sm:$0xff] }
  0x1a   : > { %v875_v15 = vld [vmem:[%s1109_s1] ss:$0 sm:$0xff] }
  0x1b   : > { %420 = vmatpush.msra.mxu0 %v392_v3  ;;  %v568_v40 = vld [vmem:[%s1038_s21] sm:$0xff] }
  0x1c   : > { %590 = vmatpush.msra.mxu1 %v568_v40  ;;  %v566_v43 = vld [vmem:[#allocation2] sm:$0xff]  ;;  %v567_v46 = vld [vmem:[#allocation2 + $0x8] sm:$0xff] }
  0x1d   : > { %421 = vmatpush.msra.mxu0 %v391_v4 }
  0x1e   : > { %821 = vmatmul.msk.f32.vlgmr.msra.gmra.mxu0 %vm399_vm1, %v1044_v5 }
  0x26   : > { %822 = vmatmul.msk.f32.gmra.mxu0 %vm399_vm1, %v1051_v6 }
  0x9b   : > { %v423_v8 = vpop.f32.mrf.mxu0 }
  0x9c   : > { %v424_v9 = vadd.f32 %v874_v7, %v423_v8 }
  0x9e   : > { %438 = vrot.lane.b32.xlu0 %v424_v9, %s955_s26 }
  0xa3   : > { %v426_v10 = vpop.f32.mrf.mxu0 }
  0xa4   : > { %v427_v11 = vadd.f32 %v874_v7, %v426_v10 }
  0xa6   : > { %466 = vrot.lane.b32.xlu0 %v427_v11, %s955_s26 }
  0xae   : > { %514 = vrot.lane.b32.xlu0 %v424_v9, %s956_s10 }
 0x110   : > { %v439_v12 = vpop.permute.xlu0 %438 }
 0x111   : > { %823 = vmatpush.xpose.msk.msra.mxu2 %vm440_vm2, %v439_v12 }
 0x114   : > { %824 = vmatmul.msk.f32.vlgmr.msra.gmra.mxu2 %vm440_vm2, %v424_v9 }
 0x118   : > { %v467_v13 = vpop.permute.xlu0 %466 }
 0x119   : > { %825 = vmatpush.xpose.msk.msrb.mxu2 %vm440_vm2, %v467_v13 }
 0x11c   : > { %826 = vmatmul.msk.f32.vlgmr.msrb.gmra.mxu2 %vm440_vm2, %v427_v11 }
 0x120   : > { %v515_v14 = vpop.permute.xlu0 %514 }
 0x121   : > { %535 = vmatpush.msra.mxu3 %v515_v14 }
 0x197   : > { %v462_v16 = vpop.f32.mrf.mxu2 }
 0x198   : > { %v463_v17 = vadd.f32 %v875_v15, %v462_v16 }
 0x19a   : > { %v492_v18 = vsel %vm440_vm2, %v463_v17, -inf }
 0x19b   : > { %493 = vmax.xlane.f32.xlu1 %v492_v18 }
 0x19f   : > { %v489_v20 = vpop.f32.mrf.mxu2 }
 0x1a0   : > { %v490_v21 = vadd.f32 %v876_v19, %v489_v20 }
 0x1a2   : > { %v495_v22 = vsel %vm440_vm2, %v490_v21, -inf }
 0x1a3   : > { %496 = vmax.xlane.f32.xlu1 %v495_v22 }
 0x1bc   : > { %540 = vrot.lane.b32.xlu1 %v427_v11, %s956_s10 }
 0x20e   : > { %v494_v23 = vpop.xlane.xlu1 %493 }
 0x20f   : > { %v498_v24 = vsub.f32 %v463_v17, %v494_v23 }
 0x211   : > { %v500_v25 = vmul.f32 1.442695, %v498_v24 }
 0x213   : > { %877 = vpow2.f32 %v500_v25 }
 0x216   : > { %v497_v26 = vpop.xlane.xlu1 %496 }
 0x217   : > { %v499_v27 = vsub.f32 %v490_v21, %v497_v26 }
 0x219   : > { %v878_v28 = vpop.eup %877  ;;  %v502_v29 = vmul.f32 1.442695, %v499_v27 }
 0x21a   : > { %v504_v30 = vsel %vm440_vm2, %v878_v28, 0.0 }
 0x21b   : > { %879 = vpow2.f32 %v502_v29  ;;  %505 = vadd.xlane.f32.xlu2 %v504_v30 }
 0x221   : > { %v880_v31 = vpop.eup %879 }
 0x222   : > { %v507_v32 = vsel %vm440_vm2, %v880_v31, 0.0 }
 0x223   : > { %508 = vadd.xlane.f32.xlu2 %v507_v32 }
 0x22e   : > { %v541_v33 = vpop.permute.xlu1 %540 }
 0x22f   : > { %561 = vmatpush.msrb.mxu3 %v541_v33 }
 0x28e   : > { %v506_v34 = vpop.xlane.xlu2 %505 }
 0x28f   : > { %881 = vrcp.f32 %v506_v34 }
 0x295   : > { %v882_v35 = vpop.eup %881 }
 0x296   : > { %v509_v36 = vpop.xlane.xlu2 %508  ;;  %v512_v37 = vmul.f32 %v882_v35, %v878_v28 }
 0x297   : > { %883 = vrcp.f32 %v509_v36 }
 0x298   : > { %827 = vmatmul.msk.f32.vlgmr.msra.gmra.mxu3 %vm440_vm2, %v512_v37 }
 0x29d   : > { %v884_v38 = vpop.eup %883 }
 0x29e   : > { %v513_v39 = vmul.f32 %v884_v38, %v880_v31 }
 0x2a0   : > { %828 = vmatmul.msk.f32.vlgmr.msrb.gmra.mxu3 %vm440_vm2, %v513_v39 }
 0x31b   : > { %v537_v41 = vpop.f32.mrf.mxu3 }
 0x31c   : > { %829 = vmatmul.msk.f32.vlgmr.msra.gmra.mxu1 %vm440_vm2, %v537_v41 }
 0x323   : > { %v563_v42 = vpop.f32.mrf.mxu3 }
 0x324   : > { %830 = vmatmul.msk.f32.gmra.mxu1 %vm440_vm2, %v563_v42 }
 0x399   : > { %v592_v44 = vpop.f32.mrf.mxu1 }
 0x39a   : > { %v598_v45 = vadd.f32 %v592_v44, %v566_v43 }
 0x39c   : > { %600 = vst.msk [vmem:[#allocation2] sm:$0xff] %vm399_vm1, %v598_v45 }
 0x3a0   : > { %605 = sbr.rel (%p831_p6) target bundleno = 1237 (0x4d5), region = 60 }
 0x3a1   : > { %v595_v47 = vpop.f32.mrf.mxu1 }
 0x3a2   : > { %v599_v48 = vadd.f32 %v595_v47, %v567_v46 }
 0x3a4   : > { %601 = vst.msk [vmem:[#allocation2 + $0x8] sm:$0xff] %vm399_vm1, %v599_v48 }
 0x3a5   : > { %v606_v49 = vld [vmem:[#allocation2] sm:$0xff]  ;;  %v957_v14 = vmov 32.0  }
 0x3a6   : > { %v885_v50 = vld [vmem:[%s1113_s5] ss:$0 sm:$0xff] }
 0x3a7   : > { %v612_v52 = vadd.f32 %v885_v50, %v606_v49  ;;  %v886_v43 = vld [vmem:[%s1114_s6] ss:$0 sm:$0xff] }
 0x3a8   : > { %v887_v46 = vld [vmem:[%s1115_s7] ss:$0 sm:$0xff] }
 0x3a9   : > { %v616_v54 = vmul.f32 0.044715, %v612_v52  ;;  %v614_v0 = vmul.f32 0.5, %v612_v52 }
 0x3ab   : > { %v607_v51 = vld [vmem:[#allocation2 + $0x8] sm:$0xff]  ;;  %v618_v56 = vmul.f32 %v616_v54, %v612_v52 }
 0x3ac   : > { %v613_v53 = vadd.f32 %v885_v50, %v607_v51 }
 0x3ad   : > { %v620_v58 = vmul.f32 %v618_v56, %v612_v52 }
 0x3ae   : > { %v617_v55 = vmul.f32 0.044715, %v613_v53  ;;  %v615_v4 = vmul.f32 0.5, %v613_v53 }
 0x3af   : > { %v622_v60 = vadd.f32 %v620_v58, %v612_v52 }
 0x3b0   : > { %v619_v57 = vmul.f32 %v617_v55, %v613_v53 }
 0x3b1   : > { %v624_v62 = vmul.f32 0.7978846, %v622_v60 }
 0x3b2   : > { %v621_v59 = vmul.f32 %v619_v57, %v613_v53 }
 0x3b3   : > { %888 = vtanh.f32 %v624_v62 }
 0x3b4   : > { %v623_v61 = vadd.f32 %v621_v59, %v613_v53 }
 0x3b6   : > { %v625_v63 = vmul.f32 0.7978846, %v623_v61 }
 0x3b8   : > { %890 = vtanh.f32 %v625_v63 }
 0x3b9   : > { %v889_v1 = vpop.eup %888  ;;  %892 = vrcp.f32 %v957_v14 }
 0x3ba   : > { %v628_v3 = vadd.f32 1.0, %v889_v1 }
 0x3bc   : > { %v630_v8 = vmul.f32 %v628_v3, %v614_v0 }
 0x3be   : > { %v891_v2 = vpop.eup %890  ;;  %v632_v9 = vadd.f32 %v630_v8, %v1044_v5 }
 0x3bf   : > { %v629_v7 = vadd.f32 1.0, %v891_v2  ;;  %v893_v15 = vpop.eup %892 }
 0x3c0   : > { %v634_v11 = vsel %vm399_vm1, %v632_v9, 0.0  ;;  %v641_v16 = vmul.f32 32.0, %v893_v15  ;;  %vm645_vm3 = vweird.f32 %v893_v15 }
 0x3c1   : > { %v631_v10 = vmul.f32 %v629_v7, %v615_v4  ;;  %635 = vadd.xlane.f32.xlu0 %v634_v11 }
 0x3c2   : > { %v642_v17 = vsub.f32 1.0, %v641_v16 }
 0x3c3   : > { %v633_v12 = vadd.f32 %v631_v10, %v1051_v6 }
 0x3c4   : > { %v643_v18 = vmul.f32 %v893_v15, %v642_v17 }
 0x3c5   : > { %v637_v13 = vsel %vm399_vm1, %v633_v12, 0.0 }
 0x3c6   : > { %v644_v19 = vadd.f32 %v893_v15, %v643_v18 }
 0x3c8   : > { %v646_v20 = vsel %vm645_vm3, %v893_v15, %v644_v19 }
 0x3c9   : > { %638 = vadd.xlane.f32.xlu0 %v637_v13 }
 0x434   : > { %v636_v21 = vpop.xlane.xlu0 %635 }
 0x435   : > { %v647_v5 = vmul.f32 %v646_v20, %v636_v21 }
 0x437   : > { %v649_v22 = vsub.f32 %v632_v9, %v647_v5 }
 0x439   : > { %v651_v23 = vmul.f32 %v649_v22, %v649_v22 }
 0x43b   : > { %v653_v24 = vsel %vm399_vm1, %v651_v23, 0.0 }
 0x43c   : > { %654 = vadd.xlane.f32.xlu1 %v653_v24  ;;  %v639_v6 = vpop.xlane.xlu0 %638 }
 0x43d   : > { %v648_v25 = vmul.f32 %v646_v20, %v639_v6 }
 0x43f   : > { %v650_v26 = vsub.f32 %v633_v12, %v648_v25 }
 0x441   : > { %v652_v27 = vmul.f32 %v650_v26, %v650_v26 }
 0x443   : > { %v656_v28 = vsel %vm399_vm1, %v652_v27, 0.0 }
 0x444   : > { %657 = vadd.xlane.f32.xlu1 %v656_v28 }
 0x4af   : > { %v655_v29 = vpop.xlane.xlu1 %654 }
 0x4b0   : > { %v659_v30 = vmul.f32 %v655_v29, %v646_v20 }
 0x4b2   : > { %v661_v31 = vadd.f32 1e-10, %v659_v30 }
 0x4b4   : > { %894 = vrsqrt.f32 %v661_v31  ;;  %vm669_vm5 = vweird.f32 %v661_v31 }
 0x4b7   : > { %v658_v32 = vpop.xlane.xlu1 %657 }
 0x4b8   : > { %v660_v33 = vmul.f32 %v658_v32, %v646_v20 }
 0x4ba   : > { %v895_v34 = vpop.eup %894  ;;  %v662_v35 = vadd.f32 1e-10, %v660_v33 }
 0x4bb   : > { %v664_v36 = vmul.f32 %v895_v34, %v661_v31  ;;  %vm670_vm4 = vweird.f32 %v895_v34 }
 0x4bc   : > { %896 = vrsqrt.f32 %v662_v35  ;;  %vm671_vm6 = vmor %vm669_vm5, %vm670_vm4  ;;  %vm679_vm8 = vweird.f32 %v662_v35 }
 0x4bd   : > { %v665_v37 = vmul.f32 %v895_v34, %v664_v36 }
 0x4bf   : > { %v666_v38 = vmul.f32 0.5, %v665_v37 }
 0x4c1   : > { %v667_v39 = vsub.f32 1.5, %v666_v38 }
 0x4c2   : > { %v897_v40 = vpop.eup %896 }
 0x4c3   : > { %v668_v41 = vmul.f32 %v895_v34, %v667_v39  ;;  %v674_v42 = vmul.f32 %v897_v40, %v662_v35  ;;  %vm680_vm7 = vweird.f32 %v897_v40 }
 0x4c4   : > { %vm681_vm9 = vmor %vm679_vm8, %vm680_vm7 }
 0x4c5   : > { %v672_v44 = vsel %vm671_vm6, %v895_v34, %v668_v41  ;;  %v675_v45 = vmul.f32 %v897_v40, %v674_v42 }
 0x4c6   : > { %v683_v47 = vmul.f32 %v672_v44, %v649_v22 }
 0x4c7   : > { %v676_v48 = vmul.f32 0.5, %v675_v45 }
 0x4c8   : > { %v689_v49 = vmul.f32 %v886_v43, %v683_v47 }
 0x4c9   : > { %v677_v50 = vsub.f32 1.5, %v676_v48 }
 0x4ca   : > { %v695_v51 = vadd.f32 %v887_v46, %v689_v49 }
 0x4cb   : > { %v678_v52 = vmul.f32 %v897_v40, %v677_v50 }
 0x4cc   : > { %697 = vst.msk [vmem:[#allocation3] sm:$0xff] %vm399_vm1, %v695_v51 }
 0x4cd   : > { %v682_v53 = vsel %vm681_vm9, %v897_v40, %v678_v52 }
 0x4ce   : > { %v684_v54 = vmul.f32 %v682_v53, %v650_v26 }
 0x4d0   : > { %v690_v55 = vmul.f32 %v886_v43, %v684_v54 }
 0x4d2   : > { %v696_v56 = vadd.f32 %v887_v46, %v690_v55 }
 0x4d4   : > { %698 = vst.msk [vmem:[#allocation3 + $0x8] sm:$0xff] %vm399_vm1, %v696_v56 }
 0x4d5 PF: > { %p841_p7 = scmp.eq.s32.totalorder %s811_s30, 3  ;;  %s709_s22 = sshll.u32 %s1116_s8, 4  ;;  %s710_s22 = int_to_ptr.hbm [resolvable:$true] %s709_s22 }
 0x4d6   : > { %s958_s23 = smov [#allocation3]   ;;  %s959_s25 = smov 128  }
 0x4d7   : > { %s707_s24 = sshll.u32 %s958_s23, 4  ;;  %s960_s26 = smov 8   ;;  %s708_s24 = int_to_ptr.vmem [resolvable:$true] %s707_s24 }
 0x4d8   : > { %838 = dma.vmem_to_hbm [thread:$0]  (%p841_p7), %s708_s24, 256, %s710_s22, [#allocation4], %s959_s25, %s959_s25, %s960_s26  }
 0x4d9   : > { %939 = dma.done.wait (%p841_p7), [#allocation4], 256  }
 0x4da   : > { %941 = vsyncadd (%p841_p7), [#allocation4], 4294967040 }
 0x4db PF: > { %s19_s29 = sadd.s32 1, %s952_s29   ;;  %s1117_s27 = smov %s948_s28 }
 0x4dc   : > { %p16_p8 = scmp.ge.s32.totalorder %s19_s29, 6   ;;  %s1118_s28 = smov %s1120_s9 }
 0x4de   :  { %18 = sbr.rel (!%p16_p8) target bundleno = 2 (0x2), region = 100 }
 0x4e3   :  { %726 = vsyncpa [#allocation4], 1 }
 0x4e4   :  { %728 = vsyncpa [#allocation4 + $0x1], 1 }

</bundles_post_ra>
